<compile_context>
chip_gen: v7x
topology: tpu7x:2x2x1
jax: 0.10.0
libtpu: 0.0.40
codegen_flags: <defaults>
</compile_context>

<pallas_src>
import functools

import jax
import jax.numpy as jnp
from jax.experimental import pallas as pl
from jax.experimental.pallas import tpu as pltpu


def _round_up(x, m):
    return ((x + m - 1) // m) * m


# ----------------------------------------------------------------------------
# Bilinear interpolation matrix (PyTorch F.interpolate, mode='bilinear',
# align_corners=False / half-pixel centers, edge-clamped).
# ----------------------------------------------------------------------------
def _bilinear_matrix(out_size, in_size):
    scale = in_size / out_size
    dst = jnp.arange(out_size, dtype=jnp.float32)
    src = (dst + 0.5) * scale - 0.5
    src = jnp.clip(src, 0.0, None)                     # PyTorch clamps negative src to 0
    i0 = jnp.floor(src).astype(jnp.int32)
    i0 = jnp.minimum(i0, in_size - 1)
    i1 = jnp.minimum(i0 + 1, in_size - 1)
    w1 = src - i0.astype(jnp.float32)
    w0 = 1.0 - w1
    m = jnp.zeros((out_size, in_size), jnp.float32)
    m = m.at[jnp.arange(out_size), i0].add(w0)
    m = m.at[jnp.arange(out_size), i1].add(w1)
    return m


# ----------------------------------------------------------------------------
# Pallas kernels
# ----------------------------------------------------------------------------
def _gemm_kernel(a_ref, b_ref, o_ref):
    # a_ref: (P, R) small resident matrix; b_ref: (R, TN) lane tile.
    o_ref[...] = jnp.dot(a_ref[...], b_ref[...],
                         preferred_element_type=jnp.float32).astype(o_ref.dtype)


def _lane_tiled_gemm(a, b, *, out_dtype=jnp.bfloat16, tn=2048):
    """a:(P,R) @ b:(R,L) with the (large) L axis tiled on the lane dimension."""
    P, R = a.shape
    _, L = b.shape
    tn = min(tn, _round_up(L, 128))
    Lp = _round_up(L, tn)
    if Lp != L:
        b = jnp.pad(b, ((0, 0), (0, Lp - L)))
    out = pl.pallas_call(
        _gemm_kernel,
        out_shape=jax.ShapeDtypeStruct((P, Lp), out_dtype),
        grid=(Lp // tn,),
        in_specs=[
            pl.BlockSpec((P, R), lambda i: (0, 0)),
            pl.BlockSpec((R, tn), lambda i: (0, i)),
        ],
        out_specs=pl.BlockSpec((P, tn), lambda i: (0, i)),
        compiler_params=pltpu.CompilerParams(dimension_semantics=("parallel",)),
    )(a, b)
    return out[:, :L]


def _conv_bn_act_kernel(pT_ref, w_ref, gamma_ref, beta_ref, o_ref,
                        sum_ref, sq_ref, *, m_total, eps, negative_slope):
    # pT_ref: (K, TM) bf16 im2col^T tile; w_ref: (Cout, K) bf16;
    # gamma/beta: (Cout, 1) f32; o_ref: (nm, Cout, TM) f32, RESIDENT across the
    # whole grid (constant block index) -> the raw conv output never hits HBM.
    i = pl.program_id(0)

    @pl.when(i == 0)
    def _():
        sum_ref[...] = jnp.zeros_like(sum_ref)
        sq_ref[...] = jnp.zeros_like(sq_ref)

    # (Cout, K) @ (K, TM) -> (Cout, TM): lane axis = M (lane-dense), f32 accum.
    y = jnp.dot(w_ref[...], pT_ref[...], preferred_element_type=jnp.float32)
    o_ref[i] = y
    sum_ref[...] += jnp.sum(y, axis=1, keepdims=True)
    sq_ref[...] += jnp.sum(y * y, axis=1, keepdims=True)

    @pl.when(i == pl.num_programs(0) - 1)
    def _():
        # Padded (zero) columns of pT contribute exactly 0 to both sums; divide
        # by the true element count m_total.
        # TODO(synk): E[x^2]-E[x]^2 can lose precision for very large batches /
        #             activations; a two-pass centered variance would be safer there.
        mean = sum_ref[...] / m_total
        var = jnp.maximum(sq_ref[...] / m_total - mean * mean, 0.0)
        scale = gamma_ref[...] * jax.lax.rsqrt(var + eps)
        shift = beta_ref[...] - mean * scale
        z = o_ref[...] * scale[None, :, :] + shift[None, :, :]
        o_ref[...] = jnp.where(z >= 0.0, z, negative_slope * z)


# ----------------------------------------------------------------------------
# Forward pass
# ----------------------------------------------------------------------------
def conv_upsampling_forward(x, weight, gamma, beta, *, kernel_size, stride=1,
                            padding=0, eps=1e-5, negative_slope=0.01):
    N, Cin, H, W = x.shape
    Cout = weight.shape[0]
    k = kernel_size
    up = kernel_size                          # self.scale_factor = kernel_size
    Hup, Wup = H * up, W * up

    # ---- 1) bilinear upsample as two wide, lane-dense GEMMs (bf16 MXU, f32 acc) ----
    mh = _bilinear_matrix(Hup, H).astype(jnp.bfloat16)    # (Hup, H)
    mw = _bilinear_matrix(Wup, W).astype(jnp.bfloat16)    # (Wup, W)

    xh = x.astype(jnp.bfloat16).transpose(2, 0, 1, 3).reshape(H, N * Cin * W)
    t1 = _lane_tiled_gemm(mh, xh)                         # (Hup, N*Cin*W)
    xw = t1.reshape(Hup, N, Cin, W).transpose(3, 1, 2, 0).reshape(W, N * Cin * Hup)
    t2 = _lane_tiled_gemm(mw, xw)                         # (Wup, N*Cin*Hup) == x_up

    Hout = (Hup + 2 * padding - k) // stride + 1
    Wout = (Wup + 2 * padding - k) // stride + 1
    K = Cin * k * k
    M = N * Hout * Wout

    # ---- 2) im2col^T layout (K, M), lane axis = M ----
    if stride == k and padding == 0:
        # Non-overlapping patches: pure reshape/transpose (no k*k HBM blow-up).
        pT = (t2.reshape(Wout, k, N, Cin, Hout, k)
                .transpose(3, 5, 1, 2, 4, 0)              # (Cin, ki, kj, N, Hout, Wout)
                .reshape(K, M))
    else:
        # TODO(synk): general stride/padding path still materializes the k*k im2col
        #             expansion in HBM; only the stride==k, padding==0 fast path avoids it.
        x_up = t2.reshape(Wup, N, Cin, Hup).transpose(1, 2, 3, 0)   # NCHW, bf16
        x_up = jnp.pad(x_up, ((0, 0), (0, 0), (padding, padding), (padding, padding)))
        cols = []
        for ki in range(k):
            for kj in range(k):
                cols.append(x_up[:, :, ki:ki + stride * Hout:stride,
                                 kj:kj + stride * Wout:stride])
        pT = (jnp.stack(cols, axis=0)
                .reshape(k, k, N, Cin, Hout, Wout)
                .transpose(3, 0, 1, 2, 4, 5)
                .reshape(K, M))

    # ---- 3) fused conv-GEMM + batch stats + BatchNorm + LeakyReLU (single kernel) ----
    TM = min(2048, _round_up(M, 128))
    Mp = _round_up(M, TM)
    if Mp != M:
        pT = jnp.pad(pT, ((0, 0), (0, Mp - M)))           # zero cols -> 0 in the sums
    nm = Mp // TM

    wT = weight.reshape(Cout, K).astype(jnp.bfloat16)     # (Cout, K), matches (ci,ki,kj)
    gamma2 = gamma.reshape(Cout, 1).astype(jnp.float32)
    beta2 = beta.reshape(Cout, 1).astype(jnp.float32)

    out_bytes = nm * Cout * TM * 4
    est_bytes = out_bytes + 4 * K * TM * 2 + (1 << 20)
    vmem_limit = int(min(48 * 2**20, max(32 * 2**20, 2 * est_bytes)))
    # TODO(synk): if Cout*Mp*4 ever exceeds VMEM (huge M), switch to a two-pass grid
    #             instead of keeping the whole (Cout, M) activation resident.

    out3 = pl.pallas_call(
        functools.partial(_conv_bn_act_kernel, m_total=M, eps=eps,
                          negative_slope=negative_slope),
        out_shape=jax.ShapeDtypeStruct((nm, Cout, TM), jnp.float32),
        grid=(nm,),
        in_specs=[
            pl.BlockSpec((K, TM), lambda i: (0, i)),
            pl.BlockSpec((Cout, K), lambda i: (0, 0)),
            pl.BlockSpec((Cout, 1), lambda i: (0, 0)),
            pl.BlockSpec((Cout, 1), lambda i: (0, 0)),
        ],
        out_specs=pl.BlockSpec((nm, Cout, TM), lambda i: (0, 0, 0)),
        scratch_shapes=[pltpu.VMEM((Cout, 1), jnp.float32),
                        pltpu.VMEM((Cout, 1), jnp.float32)],
        compiler_params=pltpu.CompilerParams(
            dimension_semantics=("arbitrary",),   # resident output + stats accumulation
            vmem_limit_bytes=vmem_limit),
    )(pT, wT, gamma2, beta2)

    # ---- 4) layout plumbing back to NCHW (small XLA transpose) ----
    yT = out3.transpose(1, 0, 2).reshape(Cout, Mp)[:, :M]           # (Cout, N*Hout*Wout)
    return yT.reshape(Cout, N, Hout, Wout).transpose(1, 0, 2, 3)    # (N, Cout, Hout, Wout)


# ----------------------------------------------------------------------------
# Pure-JAX reference (f32) for a sanity check of the Pallas pipeline
# ----------------------------------------------------------------------------
def _reference(x, weight, gamma, beta, *, kernel_size, stride, padding,
               eps=1e-5, negative_slope=0.01):
    k = kernel_size
    N, Cin, H, W = x.shape
    mh = _bilinear_matrix(H * k, H)
    mw = _bilinear_matrix(W * k, W)
    x_up = jnp.einsum('ph,nchw,qw->ncpq', mh, x, mw)
    y = jax.lax.conv_general_dilated(
        x_up, weight, (stride, stride), [(padding, padding)] * 2,
        dimension_numbers=('NCHW', 'OIHW', 'NCHW'))
    mean = y.mean(axis=(0, 2, 3), keepdims=True)
    var = y.var(axis=(0, 2, 3), keepdims=True)
    z = (y - mean) * jax.lax.rsqrt(var + eps)
    z = z * gamma.reshape(1, -1, 1, 1) + beta.reshape(1, -1, 1, 1)
    return jnp.where(z >= 0, z, negative_slope * z)


if __name__ == "__main__":
    key = jax.random.PRNGKey(0)
    kx, kw = jax.random.split(key)

    # Module config: ConvUpsampling(in_channels=4, out_channels=8, kernel_size=2, stride=2, padding=0)
    N, Cin, H, W = 2, 4, 16, 16
    Cout, k, stride, padding = 8, 2, 2, 0

    x = jax.random.normal(kx, (N, Cin, H, W), dtype=jnp.float32)
    weight = jax.random.normal(kw, (Cout, Cin, k, k), dtype=jnp.float32) * 0.1
    gamma = jnp.ones((Cout,), jnp.float32)   # BatchNorm2d weight init
    beta = jnp.zeros((Cout,), jnp.float32)   # BatchNorm2d bias init

    fwd = jax.jit(functools.partial(conv_upsampling_forward,
                                    kernel_size=k, stride=stride, padding=padding))
    out = fwd(x, weight, gamma, beta)
    out = jax.block_until_ready(out)

    ref = _reference(x, weight, gamma, beta,
                     kernel_size=k, stride=stride, padding=padding)
    assert out.shape == ref.shape == (N, Cout, (H * k - k) // stride + 1,
                                      (W * k - k) // stride + 1), out.shape
    max_err = float(jnp.max(jnp.abs(out - ref)))
    # bf16 MXU operands (vs. the all-f32 reference) -> looser tolerance than pure f32.
    assert max_err < 8e-2, f"mismatch vs f32 reference: {max_err}"

    print("KERNEL_OK")
</pallas_src>

<mosaic_0001>
module attributes {stable_mosaic.version = 11 : i64} {
  func.func private @main(%arg0: i32) attributes {dimension_semantics = [#tpu.dimension_semantics<core_parallel>], iteration_bounds = array<i64: 2>, tpu.core_type = #tpu.core_type<sc_scalar_subcore>, window_params = []} {
    return
  }
}

module attributes {stable_mosaic.version = 11 : i64} {
  func.func private @main(%arg0: i32) attributes {dimension_semantics = [#tpu.dimension_semantics<core_parallel>], iteration_bounds = array<i64: 2>, tpu.core_type = #tpu.core_type<sc_scalar_subcore>, window_params = []} {
    return
  }
}

module attributes {stable_mosaic.version = 11 : i64} {
  func.func @_gemm_kernel(%arg0: i32, %arg1: memref<32x16xbf16, #tpu.memory_space<vmem>>, %arg2: memref<16x128xbf16, #tpu.memory_space<vmem>>, %arg3: memref<32x128xbf16, #tpu.memory_space<vmem>>) attributes {dimension_semantics = [#tpu.dimension_semantics<parallel>], iteration_bounds = array<i64: 1>, scalar_prefetch = 0 : i64, scratch_operands = 0 : i64, tpu.core_type = #tpu.core_type<tc>, window_params = [{pipeline_mode = #tpu.pipeline_mode<synchronous>, transform_indices = @transform_0, window_bounds = array<i64: 32, 16>}, {transform_indices = @transform_1, window_bounds = array<i64: 16, 128>}, {transform_indices = @transform_2, window_bounds = array<i64: 32, 128>}]} {
    %c0 = arith.constant 0 : index
    %c0_0 = arith.constant 0 : index
    %0 = vector.load %arg1[%c0, %c0_0] : memref<32x16xbf16, #tpu.memory_space<vmem>>, vector<32x16xbf16>
    %c0_1 = arith.constant 0 : index
    %c0_2 = arith.constant 0 : index
    %1 = vector.load %arg2[%c0_1, %c0_2] : memref<16x128xbf16, #tpu.memory_space<vmem>>, vector<16x128xbf16>
    %cst = arith.constant dense<0.000000e+00> : vector<32x128xf32>
    %2 = tpu.matmul %0, %1, %cst {dimension_numbers = #tpu.dot_dimension_numbers<[1], [0], [0], [1], [0, 0, 1, 1], [], []>} : vector<32x16xbf16>, vector<16x128xbf16>, vector<32x128xf32> -> vector<32x128xf32>
    %3 = arith.truncf %2 : vector<32x128xf32> to vector<32x128xbf16>
    %c0_3 = arith.constant 0 : index
    %c0_4 = arith.constant 0 : index
    %4 = vector.load %arg3[%c0_3, %c0_4] : memref<32x128xbf16, #tpu.memory_space<vmem>>, vector<32x128xbf16>
    tpu.vector_store %arg3[%c0_3, %c0_4], %3 {strides = array<i32>} : memref<32x128xbf16, #tpu.memory_space<vmem>>, vector<32x128xbf16>,
    return
  }
  func.func @transform_0(%arg0: i32) -> (i32, i32) {
    %c0_i32 = arith.constant 0 : i32
    %c0_i32_0 = arith.constant 0 : i32
    %c0_i32_1 = arith.constant 0 : i32
    return %c0_i32, %c0_i32_0 : i32, i32
  }
  func.func @transform_1(%arg0: i32) -> (i32, i32) {
    %c0_i32 = arith.constant 0 : i32
    %c0_i32_0 = arith.constant 0 : i32
    return %c0_i32, %arg0 : i32, i32
  }
  func.func @transform_2(%arg0: i32) -> (i32, i32) {
    %c0_i32 = arith.constant 0 : i32
    %c0_i32_0 = arith.constant 0 : i32
    return %c0_i32, %arg0 : i32, i32
  }
}

module attributes {stable_mosaic.version = 11 : i64} {
  func.func @_gemm_kernel(%arg0: i32, %arg1: memref<32x16xbf16, #tpu.memory_space<vmem>>, %arg2: memref<16x256xbf16, #tpu.memory_space<vmem>>, %arg3: memref<32x256xbf16, #tpu.memory_space<vmem>>) attributes {dimension_semantics = [#tpu.dimension_semantics<parallel>], iteration_bounds = array<i64: 1>, scalar_prefetch = 0 : i64, scratch_operands = 0 : i64, tpu.core_type = #tpu.core_type<tc>, window_params = [{pipeline_mode = #tpu.pipeline_mode<synchronous>, transform_indices = @transform_0, window_bounds = array<i64: 32, 16>}, {transform_indices = @transform_1, window_bounds = array<i64: 16, 256>}, {transform_indices = @transform_2, window_bounds = array<i64: 32, 256>}]} {
    %c0 = arith.constant 0 : index
    %c0_0 = arith.constant 0 : index
    %0 = vector.load %arg1[%c0, %c0_0] : memref<32x16xbf16, #tpu.memory_space<vmem>>, vector<32x16xbf16>
    %c0_1 = arith.constant 0 : index
    %c0_2 = arith.constant 0 : index
    %1 = vector.load %arg2[%c0_1, %c0_2] : memref<16x256xbf16, #tpu.memory_space<vmem>>, vector<16x256xbf16>
    %cst = arith.constant dense<0.000000e+00> : vector<32x256xf32>
    %2 = tpu.matmul %0, %1, %cst {dimension_numbers = #tpu.dot_dimension_numbers<[1], [0], [0], [1], [0, 0, 1, 1], [], []>} : vector<32x16xbf16>, vector<16x256xbf16>, vector<32x256xf32> -> vector<32x256xf32>
    %3 = arith.truncf %2 : vector<32x256xf32> to vector<32x256xbf16>
    %c0_3 = arith.constant 0 : index
    %c0_4 = arith.constant 0 : index
    %4 = vector.load %arg3[%c0_3, %c0_4] : memref<32x256xbf16, #tpu.memory_space<vmem>>, vector<32x256xbf16>
    tpu.vector_store %arg3[%c0_3, %c0_4], %3 {strides = array<i32>} : memref<32x256xbf16, #tpu.memory_space<vmem>>, vector<32x256xbf16>,
    return
  }
  func.func @transform_0(%arg0: i32) -> (i32, i32) {
    %c0_i32 = arith.constant 0 : i32
    %c0_i32_0 = arith.constant 0 : i32
    %c0_i32_1 = arith.constant 0 : i32
    return %c0_i32, %c0_i32_0 : i32, i32
  }
  func.func @transform_1(%arg0: i32) -> (i32, i32) {
    %c0_i32 = arith.constant 0 : i32
    %c0_i32_0 = arith.constant 0 : i32
    return %c0_i32, %arg0 : i32, i32
  }
  func.func @transform_2(%arg0: i32) -> (i32, i32) {
    %c0_i32 = arith.constant 0 : i32
    %c0_i32_0 = arith.constant 0 : i32
    return %c0_i32, %arg0 : i32, i32
  }
}

module attributes {stable_mosaic.version = 11 : i64} {
  func.func @_conv_bn_act_kernel(%arg0: i32, %arg1: memref<16x512xbf16, #tpu.memory_space<vmem>>, %arg2: memref<8x16xbf16, #tpu.memory_space<vmem>>, %arg3: memref<8x1xf32, #tpu.memory_space<vmem>>, %arg4: memref<8x1xf32, #tpu.memory_space<vmem>>, %arg5: memref<1x8x512xf32, #tpu.memory_space<vmem>>, %arg6: memref<8x1xf32, #tpu.memory_space<vmem>>, %arg7: memref<8x1xf32, #tpu.memory_space<vmem>>) attributes {dimension_semantics = [#tpu.dimension_semantics<arbitrary>], iteration_bounds = array<i64: 1>, scalar_prefetch = 0 : i64, scratch_operands = 2 : i64, tpu.core_type = #tpu.core_type<tc>, window_params = [{transform_indices = @transform_0, window_bounds = array<i64: 16, 512>}, {pipeline_mode = #tpu.pipeline_mode<synchronous>, transform_indices = @transform_1, window_bounds = array<i64: 8, 16>}, {pipeline_mode = #tpu.pipeline_mode<synchronous>, transform_indices = @transform_2, window_bounds = array<i64: 8, 1>}, {pipeline_mode = #tpu.pipeline_mode<synchronous>, transform_indices = @transform_3, window_bounds = array<i64: 8, 1>}, {pipeline_mode = #tpu.pipeline_mode<synchronous>, transform_indices = @transform_4, window_bounds = array<i64: 1, 8, 512>}]} {
    %c0_i32 = arith.constant 0 : i32
    %0 = arith.cmpi eq, %arg0, %c0_i32 : i32
    %1 = arith.extui %0 : i1 to i32
    %c0_i32_0 = arith.constant 0 : i32
    %2 = arith.cmpi ne, %1, %c0_i32_0 : i32
    scf.if %2 {
      %cst_18 = arith.constant 0.000000e+00 : f32
      %24 = vector.broadcast %cst_18 : f32 to vector<8x1xf32>
      %c0_19 = arith.constant 0 : index
      %c0_20 = arith.constant 0 : index
      %25 = vector.load %arg6[%c0_19, %c0_20] : memref<8x1xf32, #tpu.memory_space<vmem>>, vector<8x1xf32>
      tpu.vector_store %arg6[%c0_19, %c0_20], %24 {strides = array<i32>} : memref<8x1xf32, #tpu.memory_space<vmem>>, vector<8x1xf32>,
      %cst_21 = arith.constant 0.000000e+00 : f32
      %26 = vector.broadcast %cst_21 : f32 to vector<8x1xf32>
      %c0_22 = arith.constant 0 : index
      %c0_23 = arith.constant 0 : index
      %27 = vector.load %arg7[%c0_22, %c0_23] : memref<8x1xf32, #tpu.memory_space<vmem>>, vector<8x1xf32>
      tpu.vector_store %arg7[%c0_22, %c0_23], %26 {strides = array<i32>} : memref<8x1xf32, #tpu.memory_space<vmem>>, vector<8x1xf32>,
    } else {
    }
    %c0 = arith.constant 0 : index
    %c0_1 = arith.constant 0 : index
    %3 = vector.load %arg2[%c0, %c0_1] : memref<8x16xbf16, #tpu.memory_space<vmem>>, vector<8x16xbf16>
    %c0_2 = arith.constant 0 : index
    %c0_3 = arith.constant 0 : index
    %4 = vector.load %arg1[%c0_2, %c0_3] : memref<16x512xbf16, #tpu.memory_space<vmem>>, vector<16x512xbf16>
    %cst = arith.constant dense<0.000000e+00> : vector<8x512xf32>
    %5 = tpu.matmul %3, %4, %cst {dimension_numbers = #tpu.dot_dimension_numbers<[1], [0], [0], [1], [0, 0, 1, 1], [], []>} : vector<8x16xbf16>, vector<16x512xbf16>, vector<8x512xf32> -> vector<8x512xf32>
    %6 = arith.index_cast %arg0 : i32 to index
    %c0_4 = arith.constant 0 : index
    %c0_5 = arith.constant 0 : index
    %7 = vector.load %arg5[%6, %c0_4, %c0_5] : memref<1x8x512xf32, #tpu.memory_space<vmem>>, vector<1x8x512xf32>
    %8 = vector.shape_cast %7 : vector<1x8x512xf32> to vector<8x512xf32>
    %9 = vector.shape_cast %5 : vector<8x512xf32> to vector<1x8x512xf32>
    tpu.vector_store %arg5[%6, %c0_4, %c0_5], %9 {strides = array<i32>} : memref<1x8x512xf32, #tpu.memory_space<vmem>>, vector<1x8x512xf32>,
    %c0_6 = arith.constant 0 : index
    %c0_7 = arith.constant 0 : index
    %10 = vector.load %arg6[%c0_6, %c0_7] : memref<8x1xf32, #tpu.memory_space<vmem>>, vector<8x1xf32>
    %cst_8 = arith.constant dense<0.000000e+00> : vector<8xf32>
    %11 = vector.multi_reduction <add>, %5, %cst_8 [1] : vector<8x512xf32> to vector<8xf32>
    %12 = vector.shape_cast %11 : vector<8xf32> to vector<8x1xf32>
    %13 = arith.addf %10, %12 : vector<8x1xf32>
    %c0_9 = arith.constant 0 : index
    %c0_10 = arith.constant 0 : index
    %14 = vector.load %arg6[%c0_9, %c0_10] : memref<8x1xf32, #tpu.memory_space<vmem>>, vector<8x1xf32>
    tpu.vector_store %arg6[%c0_9, %c0_10], %13 {strides = array<i32>} : memref<8x1xf32, #tpu.memory_space<vmem>>, vector<8x1xf32>,
    %c0_11 = arith.constant 0 : index
    %c0_12 = arith.constant 0 : index
    %15 = vector.load %arg7[%c0_11, %c0_12] : memref<8x1xf32, #tpu.memory_space<vmem>>, vector<8x1xf32>
    %16 = arith.mulf %5, %5 : vector<8x512xf32>
    %cst_13 = arith.constant dense<0.000000e+00> : vector<8xf32>
    %17 = vector.multi_reduction <add>, %16, %cst_13 [1] : vector<8x512xf32> to vector<8xf32>
    %18 = vector.shape_cast %17 : vector<8xf32> to vector<8x1xf32>
    %19 = arith.addf %15, %18 : vector<8x1xf32>
    %c0_14 = arith.constant 0 : index
    %c0_15 = arith.constant 0 : index
    %20 = vector.load %arg7[%c0_14, %c0_15] : memref<8x1xf32, #tpu.memory_space<vmem>>, vector<8x1xf32>
    tpu.vector_store %arg7[%c0_14, %c0_15], %19 {strides = array<i32>} : memref<8x1xf32, #tpu.memory_space<vmem>>, vector<8x1xf32>,
    %c0_i32_16 = arith.constant 0 : i32
    %21 = arith.cmpi eq, %arg0, %c0_i32_16 : i32
    %22 = arith.extui %21 : i1 to i32
    %c0_i32_17 = arith.constant 0 : i32
    %23 = arith.cmpi ne, %22, %c0_i32_17 : i32
    scf.if %23 {
      %c0_18 = arith.constant 0 : index
      %c0_19 = arith.constant 0 : index
      %24 = vector.load %arg6[%c0_18, %c0_19] : memref<8x1xf32, #tpu.memory_space<vmem>>, vector<8x1xf32>
      %cst_20 = arith.constant 5.120000e+02 : f32
      %25 = vector.broadcast %cst_20 : f32 to vector<8x1xf32>
      %26 = arith.divf %24, %25 : vector<8x1xf32>
      %c0_21 = arith.constant 0 : index
      %c0_22 = arith.constant 0 : index
      %27 = vector.load %arg7[%c0_21, %c0_22] : memref<8x1xf32, #tpu.memory_space<vmem>>, vector<8x1xf32>
      %cst_23 = arith.constant 5.120000e+02 : f32
      %28 = vector.broadcast %cst_23 : f32 to vector<8x1xf32>
      %29 = arith.divf %27, %28 : vector<8x1xf32>
      %30 = arith.mulf %26, %26 : vector<8x1xf32>
      %31 = arith.subf %29, %30 : vector<8x1xf32>
      %cst_24 = arith.constant 0.000000e+00 : f32
      %32 = vector.broadcast %cst_24 : f32 to vector<8x1xf32>
      %33 = arith.maximumf %31, %32 : vector<8x1xf32>
      %c0_25 = arith.constant 0 : index
      %c0_26 = arith.constant 0 : index
      %34 = vector.load %arg3[%c0_25, %c0_26] : memref<8x1xf32, #tpu.memory_space<vmem>>, vector<8x1xf32>
      %cst_27 = arith.constant 9.99999974E-6 : f32
      %35 = vector.broadcast %cst_27 : f32 to vector<8x1xf32>
      %36 = arith.addf %33, %35 : vector<8x1xf32>
      %37 = math.rsqrt %36 : vector<8x1xf32>
      %38 = arith.mulf %34, %37 : vector<8x1xf32>
      %c0_28 = arith.constant 0 : index
      %c0_29 = arith.constant 0 : index
      %39 = vector.load %arg4[%c0_28, %c0_29] : memref<8x1xf32, #tpu.memory_space<vmem>>, vector<8x1xf32>
      %40 = arith.mulf %26, %38 : vector<8x1xf32>
      %41 = arith.subf %39, %40 : vector<8x1xf32>
      %c0_30 = arith.constant 0 : index
      %c0_31 = arith.constant 0 : index
      %c0_32 = arith.constant 0 : index
      %42 = vector.load %arg5[%c0_30, %c0_31, %c0_32] : memref<1x8x512xf32, #tpu.memory_space<vmem>>, vector<1x8x512xf32>
      %43 = vector.shape_cast %38 : vector<8x1xf32> to vector<1x8x1xf32>
      %44 = vector.broadcast %43 : vector<1x8x1xf32> to vector<1x8x512xf32>
      %45 = arith.mulf %42, %44 : vector<1x8x512xf32>
      %46 = vector.shape_cast %41 : vector<8x1xf32> to vector<1x8x1xf32>
      %47 = vector.broadcast %46 : vector<1x8x1xf32> to vector<1x8x512xf32>
      %48 = arith.addf %45, %47 : vector<1x8x512xf32>
      %cst_33 = arith.constant 0.000000e+00 : f32
      %49 = vector.broadcast %cst_33 : f32 to vector<1x8x512xf32>
      %50 = arith.cmpf oge, %48, %49 : vector<1x8x512xf32>
      %cst_34 = arith.constant 0.00999999977 : f32
      %51 = vector.broadcast %cst_34 : f32 to vector<1x8x512xf32>
      %52 = arith.mulf %51, %48 : vector<1x8x512xf32>
      %53 = arith.select %50, %48, %52 : vector<1x8x512xi1>, vector<1x8x512xf32>
      %c0_35 = arith.constant 0 : index
      %c0_36 = arith.constant 0 : index
      %c0_37 = arith.constant 0 : index
      %54 = vector.load %arg5[%c0_35, %c0_36, %c0_37] : memref<1x8x512xf32, #tpu.memory_space<vmem>>, vector<1x8x512xf32>
      tpu.vector_store %arg5[%c0_35, %c0_36, %c0_37], %53 {strides = array<i32>} : memref<1x8x512xf32, #tpu.memory_space<vmem>>, vector<1x8x512xf32>,
    } else {
    }
    return
  }
  func.func @transform_0(%arg0: i32) -> (i32, i32) {
    %c0_i32 = arith.constant 0 : i32
    %c0_i32_0 = arith.constant 0 : i32
    return %c0_i32, %arg0 : i32, i32
  }
  func.func @transform_1(%arg0: i32) -> (i32, i32) {
    %c0_i32 = arith.constant 0 : i32
    %c0_i32_0 = arith.constant 0 : i32
    %c0_i32_1 = arith.constant 0 : i32
    return %c0_i32, %c0_i32_0 : i32, i32
  }
  func.func @transform_2(%arg0: i32) -> (i32, i32) {
    %c0_i32 = arith.constant 0 : i32
    %c0_i32_0 = arith.constant 0 : i32
    %c0_i32_1 = arith.constant 0 : i32
    return %c0_i32, %c0_i32_0 : i32, i32
  }
  func.func @transform_3(%arg0: i32) -> (i32, i32) {
    %c0_i32 = arith.constant 0 : i32
    %c0_i32_0 = arith.constant 0 : i32
    %c0_i32_1 = arith.constant 0 : i32
    return %c0_i32, %c0_i32_0 : i32, i32
  }
  func.func @transform_4(%arg0: i32) -> (i32, i32, i32) {
    %c0_i32 = arith.constant 0 : i32
    %c0_i32_0 = arith.constant 0 : i32
    %c0_i32_1 = arith.constant 0 : i32
    %c0_i32_2 = arith.constant 0 : i32
    return %c0_i32, %c0_i32_0, %c0_i32_1 : i32, i32, i32
  }
}

</mosaic_0001>

<bundles_post_ra>
// kernel: conv_upsampling_forward.4
= control target key start
LH: loop header
LB: loop body
LE: loop exit
PB: predicated region body
PF: predicated region fallthrough
CT: control target
= control target key end

     0   :  { %v152_v1 = vmov 0   ;;  %vm38_vm0 = vcmask 130048   ;;  %s192_s1 = inlined_call_operand.vmem [shape: bf16[16,256], index: 1, kind: input, shape index: {}]   ;;  %s193_s0 = inlined_call_operand.vmem [shape: bf16[32,16], index: 0, kind: input, shape index: {}]   ;;  %s194_s2 = inlined_call_operand.vmem [shape: bf16[32,256], index: 2, kind: output, shape index: {}]  }
   0x1   :  { %v147_v0 = vld [vmem:[%s192_s1 + $0x4] ss:$8 sps:$4 sm:$0xff]   ;;  %77 = vmatprep.mubr.bf16.mxu0 %v152_v1  ;;  %87 = vmatprep.mubr.bf16.mxu1 %v152_v1  ;;  %v149_v2 = vld [vmem:[%s192_s1] ss:$8 sps:$4 sm:$0xff]  }
   0x2   :  { %45 = vmatprep.subr.bf16.mxu0 %v147_v0  ;;  %144 = vmatprep.subr.bf16.mxu1 %v147_v0  ;;  %v150_v3 = vld [vmem:[%s193_s0] sm:$0xff]   ;;  %v151_v4 = vld [vmem:[%s193_s0 + $0x8] sm:$0xff]  }
   0x3   :  { %46 = vmatpush1.bf16.msra.mxu0 %v149_v2  ;;  %145 = vmatpush1.bf16.msra.mxu1 %v149_v2 }
   0x6   :  { %134 = vmatmul.mubr.msk.bf16.vlgmr.msra.gmra.mrb[0].mxu0 %vm38_vm0, %v150_v3  ;;  %135 = vmatmul.mubr.msk.bf16.vlgmr.msra.gmra.mrb[0].mxu1 %vm38_vm0, %v151_v4 }
  0xd9   :  { %v79_v5 = vpop.f32.mrb[0].mxu0  ;;  %v89_v6 = vpop.f32.mrb[0].mxu1 }
  0xda   :  { %v81_v7 = vpop.f32.mrb[1].mxu0  ;;  %v91_v8 = vpop.f32.mrb[1].mxu1 }
  0xdb   :  { %v140_v9 = vpack.c.bf16 %v81_v7, %v79_v5  ;;  %v142_v10 = vpack.c.bf16 %v91_v8, %v89_v6  ;;  %v83_v11 = vpop.f32.mrb[2].mxu0  ;;  %v93_v12 = vpop.f32.mrb[2].mxu1 }
  0xdc   :  { %v85_v13 = vpop.f32.mrb[3].mxu0  ;;  %v95_v14 = vpop.f32.mrb[3].mxu1 }
  0xdd   :  { %122 = vst [vmem:[%s194_s2] sm:$0xff] %v140_v9  ;;  %124 = vst [vmem:[%s194_s2 + $0x10] sm:$0xff] %v142_v10  ;;  %v141_v15 = vpack.c.bf16 %v85_v13, %v83_v11  ;;  %v143_v16 = vpack.c.bf16 %v95_v14, %v93_v12 }
  0xdf   :  { %123 = vst [vmem:[%s194_s2 + $0x8] sm:$0xff] %v141_v15  ;;  %125 = vst [vmem:[%s194_s2 + $0x18] sm:$0xff] %v143_v16 }

// kernel: conv_upsampling_forward.3
= control target key start
LH: loop header
LB: loop body
LE: loop exit
PB: predicated region body
PF: predicated region fallthrough
CT: control target
= control target key end

     0   :  { %vm34_vm0 = vcmask 130048   ;;  %s180_s1 = inlined_call_operand.vmem [shape: bf16[16,128], index: 1, kind: input, shape index: {}]   ;;  %s181_s0 = inlined_call_operand.vmem [shape: bf16[32,16], index: 0, kind: input, shape index: {}]   ;;  %s182_s2 = inlined_call_operand.vmem [shape: bf16[32,128], index: 2, kind: output, shape index: {}]  }
   0x1   :  { %v147_v0 = vld [vmem:[%s180_s1] sm:$0xff]   ;;  %v149_v2 = vld [vmem:[%s181_s0 + $0x8] sm:$0xff]  }
   0x2   :  { %v148_v1 = vld [vmem:[%s181_s0] sm:$0xff]   ;;  %141 = vmatprep.subr.bf16.mxu0 %v147_v0 }
   0x3   :  { %142 = vmatpush3.bf16.msra.mxu0 %v147_v0  ;;  %143 = vmatprep.mubr.msk.bf16.mxu0 %vm34_vm0, %v148_v1 }
   0x6   :  { %144 = vmatmul.mubr.msk.bf16.vlgmr.msra.gmra.mrb[0].mxu0 %vm34_vm0, %v149_v2 }
  0xd9   :  { %v145_v3 = vpop.f32.mrb[0].mxu0 }
  0xda   :  { %v75_v4 = vpop.f32.mrb[1].mxu0 }
  0xdb   :  { %v146_v5 = vpop.f32.mrb[2].mxu0 }
  0xdc   :  { %v135_v6 = vpack.c.bf16 %v146_v5, %v145_v3  ;;  %v78_v7 = vpop.f32.mrb[3].mxu0 }
  0xdd   :  { %v130_v8 = vpack.c.bf16 %v78_v7, %v75_v4 }
  0xde   :  { %137 = vst [vmem:[%s182_s2 + $0x8] sm:$0xff] %v135_v6  }
  0xdf   :  { %131 = vst [vmem:[%s182_s2] sm:$0xff] %v130_v8  }

// kernel: conv_upsampling_forward.5
= control target key start
LH: loop header
LB: loop body
LE: loop exit
PB: predicated region body
PF: predicated region fallthrough
CT: control target
= control target key end

     0   :  { %v242_v1 = vmov 0   ;;  %vm50_vm0 = vcmask 130048   ;;  %vm22_vm1 = vcmask 7168   ;;  %v243_v6 = vmov 0.0   ;;  %s306_s0 = inlined_call_operand.vmem [shape: bf16[16,512], index: 0, kind: input, shape index: {}]   ;;  %s307_s1 = inlined_call_operand.vmem [shape: bf16[8,16], index: 1, kind: input, shape index: {}]   ;;  %s308_s2 = inlined_call_operand.vmem [shape: f32[8,1], index: 2, kind: input, shape index: {}]   ;;  %s309_s3 = inlined_call_operand.vmem [shape: f32[8,1], index: 3, kind: input, shape index: {}]   ;;  %s310_s4 = inlined_call_operand.vmem [shape: f32[1,8,512], index: 4, kind: output, shape index: {}]  }
   0x1   :  { %v234_v0 = vld [vmem:[%s306_s0 + $0x4] ss:$16 sps:$4 sm:$0xff]   ;;  %86 = vmatprep.mubr.bf16.mxu0 %v242_v1  ;;  %127 = vmatprep.mubr.bf16.mxu1 %v242_v1  ;;  %v236_v2 = vld [vmem:[%s306_s0 + $0xc] ss:$16 sps:$4 sm:$0xff]   ;;  %v238_v3 = vld [vmem:[%s306_s0] ss:$16 sps:$4 sm:$0xff]  }
   0x2   :  { %232 = vset.pattern.permute.xlu1 %v242_v1  ;;  %233 = vset.pattern.permute.xlu0 %v242_v1  ;;  %v239_v4 = vld [vmem:[%s306_s0 + $0x8] ss:$16 sps:$4 sm:$0xff]   ;;  %v25_v5 = vld [vmem:[%s307_s1] sm:$0xf]  ;;  %23 = vst.msk [vmem:[#allocation2] sm:$0xff] %vm22_vm1, %v243_v6  ;;  %24 = vst.msk [vmem:[#allocation3] sm:$0xff] %vm22_vm1, %v243_v6 }
   0x3   :  { %54 = vmatprep.subr.bf16.mxu0 %v234_v0  ;;  %95 = vmatprep.subr.bf16.mxu1 %v236_v2  ;;  %v175_v39 = vld [vmem:[%s308_s2] sm:$0xff] }
   0x4   :  { %55 = vmatpush1.bf16.msra.mxu0 %v238_v3  ;;  %96 = vmatpush1.bf16.msra.mxu1 %v239_v4  ;;  %v179_v42 = vld [vmem:[%s309_s3] sm:$0xff] }
   0x7   :  { %228 = vmatmul.mubr.msk.bf16.vlgmr.msra.gmra.mrb[0].mxu0 %vm50_vm0, %v25_v5  ;;  %229 = vmatmul.mubr.msk.bf16.vlgmr.msra.gmra.mrb[0].mxu1 %vm50_vm0, %v25_v5 }
   0x9   :  { %v143_v25 = vld [vmem:[#allocation2] sm:$0xff]  ;;  %v152_v28 = vld [vmem:[#allocation3] sm:$0xff] }
  0xda   :  { %v88_v7 = vpop.f32.mrb[0].mxu0  ;;  %v129_v8 = vpop.f32.mrb[0].mxu1 }
  0xdb   :  { %v153_v9 = vmul.f32 %v88_v7, %v88_v7  ;;  %v90_v10 = vpop.f32.mrb[1].mxu0  ;;  %v131_v11 = vpop.f32.mrb[1].mxu1  ;;  %v155_v12 = vmul.f32 %v129_v8, %v129_v8 }
  0xdc   :  { %v144_v13 = vadd.f32 %v90_v10, %v88_v7  ;;  %v154_v14 = vmul.f32 %v90_v10, %v90_v10  ;;  %v92_v15 = vpop.f32.mrb[2].mxu0  ;;  %v133_v16 = vpop.f32.mrb[2].mxu1  ;;  %v156_v22 = vmul.f32 %v131_v11, %v131_v11 }
  0xdd   :  { %v93_v17 = vpop.f32.mrb[3].mxu0  ;;  %v134_v18 = vpop.f32.mrb[3].mxu1 }
  0xde   :  { %v145_v19 = vadd.f32 %v144_v13, %v129_v8  ;;  %v157_v20 = vadd.f32 %v154_v14, %v153_v9 }
  0xe0   :  { %v146_v21 = vadd.f32 %v145_v19, %v131_v11  ;;  %v158_v23 = vadd.f32 %v157_v20, %v155_v12 }
  0xe2   :  { %147 = vadd.xlane.f32.xlu0 %v146_v21  ;;  %v159_v24 = vadd.f32 %v158_v23, %v156_v22 }
  0xe6   :  { %160 = vadd.xlane.f32.xlu0 %v159_v24 }
 0x16f   :  { %v148_v26 = vpop.xlane.xlu0 %147 }
 0x170   :  { %v149_v27 = vadd.f32 %v148_v26, %v143_v25 }
 0x172   :  { %151 = vst.msk [vmem:[#allocation2] sm:$0xff] %vm22_vm1, %v149_v27 }
 0x173   :  { %v161_v29 = vpop.xlane.xlu0 %160 }
 0x174   :  { %v162_v30 = vadd.f32 %v161_v29, %v152_v28 }
 0x176   :  { %163 = vst.msk [vmem:[#allocation3] sm:$0xff] %vm22_vm1, %v162_v30 }
 0x179   :  { %v167_v31 = vld [vmem:[#allocation2] sm:$0xff] }
 0x17a   :  { %v169_v32 = vmul.f32 0.001953125, %v167_v31 }
 0x17c   :  { %v172_v35 = vmul.f32 %v169_v32, %v169_v32 }
 0x17d   :  { %v170_v33 = vld [vmem:[#allocation3] sm:$0xff] }
 0x17e   :  { %v171_v34 = vmul.f32 0.001953125, %v170_v33 }
 0x180   :  { %v173_v36 = vsub.f32 %v171_v34, %v172_v35 }
 0x182   :  { %v174_v37 = vmax.f32 %v173_v36, 0.0 }
 0x184   :  { %v176_v38 = vadd.f32 1e-05, %v174_v37 }
 0x186   :  { %240 = vrsqrt.f32 %v176_v38 }
 0x190   :  { %v241_v40 = vpop.eup %240 }
 0x191   :  { %v178_v41 = vmul.f32 %v241_v40, %v175_v39 }
 0x193   :  { %188 = vperm.xlu1 %232, %v178_v41   ;;  %v180_v43 = vmul.f32 %v178_v41, %v169_v32 }
 0x195   :  { %v181_v44 = vsub.f32 %v179_v42, %v180_v43 }
 0x197   :  { %197 = vperm.xlu1 %232, %v181_v44  }
 0x212   :  { %v189_v45 = vpop.permute.xlu1 %188 }
 0x213   :  { %v191_v46 = vmul.f32 %v189_v45, %v88_v7  ;;  %v193_v47 = vmul.f32 %v189_v45, %v129_v8  ;;  %v194_v48 = vmul.f32 %v189_v45, %v131_v11  ;;  %v192_v49 = vmul.f32 %v189_v45, %v90_v10 }
 0x216   :  { %v198_v50 = vpop.permute.xlu1 %197 }
 0x217   :  { %v200_v51 = vadd.f32 %v198_v50, %v191_v46  ;;  %v201_v52 = vadd.f32 %v198_v50, %v192_v49  ;;  %v202_v53 = vadd.f32 %v198_v50, %v193_v47  ;;  %v203_v54 = vadd.f32 %v198_v50, %v194_v48 }
 0x219   :  { %vm204_vm2 = vcmp.ge.f32.partialorder %v200_v51, 0.0  ;;  %vm205_vm3 = vcmp.ge.f32.partialorder %v201_v52, 0.0  ;;  %vm206_vm4 = vcmp.ge.f32.partialorder %v202_v53, 0.0  ;;  %vm207_vm5 = vcmp.ge.f32.partialorder %v203_v54, 0.0 }
 0x21a   :  { %v208_v55 = vmul.f32 0.01, %v200_v51  ;;  %v209_v56 = vmul.f32 0.01, %v201_v52  ;;  %v210_v57 = vmul.f32 0.01, %v202_v53 }
 0x21b   :  { %v211_v58 = vmul.f32 0.01, %v203_v54 }
 0x21c   :  { %v212_v59 = vsel %vm204_vm2, %v200_v51, %v208_v55  ;;  %v213_v60 = vsel %vm205_vm3, %v201_v52, %v209_v56  ;;  %v214_v61 = vsel %vm206_vm4, %v202_v53, %v210_v57 }
 0x21d   :  { %v215_v62 = vsel %vm207_vm5, %v203_v54, %v211_v58  ;;  %216 = vst [vmem:[%s310_s4] sm:$0xff] %v212_v59  ;;  %217 = vst [vmem:[%s310_s4 + $0x8] sm:$0xff] %v213_v60 }
 0x21e   :  { %218 = vst [vmem:[%s310_s4 + $0x10] sm:$0xff] %v214_v61  ;;  %219 = vst [vmem:[%s310_s4 + $0x18] sm:$0xff] %v215_v62 }

</bundles_post_ra>
